<compile_context>
chip_gen: v7x
topology: tpu7x:2x2x1
jax: 0.10.0
libtpu: 0.0.40
codegen_flags: <defaults>
</compile_context>

<pallas_src>
import functools

import jax
import jax.numpy as jnp
from jax import lax
from jax.experimental import pallas as pl
from jax.experimental.pallas import tpu as pltpu


def _round_up(x, m):
    return (x + m - 1) // m * m


def _choose_row_tile(h_out, w_out, target_rows=2048):
    """Largest TH | H_out with (TH*W_out) % 8 == 0 and TH*W_out <= target_rows."""
    cand = [th for th in range(1, h_out + 1)
            if h_out % th == 0 and (th * w_out) % 8 == 0]
    if not cand:
        # Single full-height tile: the output block then equals the full (N, C) dims,
        # which is always legal (stores may be sublane-masked in this degenerate case).
        return h_out
    within = [th for th in cand if th * w_out <= target_rows]
    return max(within) if within else min(cand)


def _patch_embed_kernel(x_ref, w_ref, shift_ref, out_ref, *, th, w_out, n_q, kq_pad):
    """One (batch, row-tile) grid step.

    x_ref     : (H_blk, W_blk, kq_pad)        space-to-depth input, full rows for batch b
    w_ref     : (n_q*n_q*kq_pad, C_out_pad)   phase-fused, BN-scaled conv weights
    shift_ref : (1, C_out_pad)                folded conv-bias + BN shift (f32)
    out_ref   : (th*w_out, C_out_pad)         flattened (N, C) output tile (lane-dense)
    """
    ht = pl.program_id(1)
    row0 = pl.multiple_of(ht * th, th)

    # Gather the n_q*n_q unit-stride phase windows once per row tile and fuse them
    # along the contraction dim -> one MXU matmul with K = n_q*n_q*kq_pad.
    slabs = []
    for qh in range(n_q):
        for qw in range(n_q):
            slab = x_ref[pl.ds(row0 + qh, th), qw:qw + w_out, :]      # (th, w_out, kq_pad)
            slabs.append(slab.reshape(th * w_out, kq_pad))
    lhs = jnp.concatenate(slabs, axis=-1)                             # (th*w_out, K)

    acc = jnp.dot(lhs, w_ref[...], preferred_element_type=jnp.float32)
    out_ref[...] = (acc + shift_ref[...]).astype(out_ref.dtype)


def overlap_patch_embed(x_nchw, params, *, patch_size=7, stride=4,
                        compute_dtype=jnp.bfloat16, out_dtype=None,
                        row_tile_rows=2048, eps=1e-5):
    """PyTorch-facing wrapper: NCHW in, (B, N, embed_dim) out (plus H, W)."""
    B, C_in, H_in, W_in = x_nchw.shape
    K, S = patch_size, stride
    pad = K // 2
    H_out = (H_in + 2 * pad - K) // S + 1
    W_out = (W_in + 2 * pad - K) // S + 1
    n_q = (K - 1) // S + 1                       # phase blocks per spatial axis (=2)
    Kq = S * S * C_in                            # raw contraction per phase
    kq_pad = pl.next_power_of_2(Kq) if Kq <= 128 else _round_up(Kq, 128)
    C_out = params["w"].shape[-1]
    C_out_pad = _round_up(C_out, 128)            # lane-dense output stores
    H_blk, W_blk = H_out + n_q - 1, W_out + n_q - 1
    if compute_dtype is None:
        compute_dtype = x_nchw.dtype
    if out_dtype is None:
        out_dtype = x_nchw.dtype

    # ---- host-side glue (only touches the tiny C_in-channel input / weights) ----
    # NCHW -> NHWC, zero-pad, space-to-depth by `stride`: every conv tap becomes a
    # unit-stride window in (block-row, block-col) space.
    x = jnp.transpose(x_nchw, (0, 2, 3, 1))
    x = jnp.pad(x, ((0, 0),
                    (pad, S * H_blk - pad - H_in),
                    (pad, S * W_blk - pad - W_in),
                    (0, 0)))
    x = x.reshape(B, H_blk, S, W_blk, S, C_in)
    x = x.transpose(0, 1, 3, 2, 4, 5).reshape(B, H_blk, W_blk, Kq)
    if kq_pad > Kq:
        x = jnp.pad(x, ((0, 0), (0, 0), (0, 0), (0, kq_pad - Kq)))
    x = x.astype(compute_dtype)

    # Fold conv bias + eval-mode BatchNorm into per-channel scale/shift; fold the
    # scale into the weights so the kernel epilogue is a single broadcast add.
    scale = params["gamma"] * lax.rsqrt(params["var"] + eps)          # (C_out,)
    shift = (params["b"] - params["mean"]) * scale + params["beta"]   # (C_out,)

    # Pack conv weight (K, K, C_in, C_out) -> one fused (n_q*n_q*kq_pad, C_out_pad).
    Kp = S * n_q
    w = params["w"].astype(jnp.float32) * scale                       # fold BN scale
    wq = jnp.pad(w, ((0, Kp - K), (0, Kp - K), (0, 0), (0, 0)))
    wq = wq.reshape(n_q, S, n_q, S, C_in, C_out).transpose(0, 2, 1, 3, 4, 5)
    wq = wq.reshape(n_q, n_q, Kq, C_out)
    wq = jnp.pad(wq, ((0, 0), (0, 0), (0, kq_pad - Kq), (0, C_out_pad - C_out)))
    wq = wq.reshape(n_q * n_q * kq_pad, C_out_pad).astype(compute_dtype)

    shift = jnp.pad(shift, (0, C_out_pad - C_out))
    shift = shift.reshape(1, C_out_pad).astype(jnp.float32)

    TH = _choose_row_tile(H_out, W_out, row_tile_rows)
    n_ht = H_out // TH
    N = H_out * W_out
    rows = TH * W_out

    # VMEM working-set estimate -> explicit, generation-safe scoped-VMEM limit
    # (>= 32 MiB so v5e/v6e aren't under-capped; <= 48 MiB so it fits v7x's 64 MiB/TC).
    itemsize = jnp.dtype(compute_dtype).itemsize
    out_itemsize = jnp.dtype(out_dtype).itemsize
    vmem_est = (2 * H_blk * W_blk * kq_pad * itemsize          # x slab (double-buffered)
                + 2 * wq.size * itemsize                       # fused weights
                + 2 * rows * C_out_pad * out_itemsize          # output tile (double-buffered)
                + rows * n_q * n_q * kq_pad * itemsize         # fused lhs temp
                + rows * C_out_pad * 4                         # f32 accumulator temp
                + 8 * C_out_pad)
    vmem_limit = int(min(max(32 * 1024 * 1024, vmem_est * 3 // 2), 48 * 1024 * 1024))

    kernel = functools.partial(_patch_embed_kernel, th=TH, w_out=W_out,
                               n_q=n_q, kq_pad=kq_pad)

    out = pl.pallas_call(
        kernel,
        grid=(B, n_ht),
        in_specs=[
            # Full space-to-depth rows for the current batch (block index depends only
            # on b, so Pallas keeps it VMEM-resident across the row-tile axis).
            pl.BlockSpec((None, H_blk, W_blk, kq_pad), lambda b, h: (b, 0, 0, 0)),
            pl.BlockSpec((n_q * n_q * kq_pad, C_out_pad), lambda b, h: (0, 0)),
            pl.BlockSpec((1, C_out_pad), lambda b, h: (0, 0)),
        ],
        out_specs=pl.BlockSpec((None, rows, C_out_pad), lambda b, h: (b, h, 0)),
        out_shape=jax.ShapeDtypeStruct((B, N, C_out_pad), out_dtype),
        compiler_params=pltpu.CompilerParams(
            dimension_semantics=("parallel", "parallel"),
            vmem_limit_bytes=vmem_limit,
        ),
    )(x, wq, shift)

    if C_out_pad != C_out:
        out = out[:, :, :C_out]
    return out, H_out, W_out


def init_params(key, in_chans, embed_dim, patch_size=7):
    k = jax.random.split(key, 6)
    fan_out = patch_size * patch_size * embed_dim
    std = (2.0 / fan_out) ** 0.5
    return {
        "w": std * jax.random.normal(
            k[0], (patch_size, patch_size, in_chans, embed_dim), jnp.float32),  # HWIO
        "b": 0.1 * jax.random.normal(k[1], (embed_dim,), jnp.float32),
        "gamma": 1.0 + 0.1 * jax.random.normal(k[2], (embed_dim,), jnp.float32),
        "beta": 0.1 * jax.random.normal(k[3], (embed_dim,), jnp.float32),
        "mean": 0.1 * jax.random.normal(k[4], (embed_dim,), jnp.float32),
        "var": jnp.abs(jax.random.normal(k[5], (embed_dim,), jnp.float32)) + 0.5,
    }


def reference_forward(x_nchw, params, *, patch_size=7, stride=4, eps=1e-5):
    # Pure-JAX reference matching the PyTorch module (eval-mode BatchNorm).
    pad = patch_size // 2
    w = jnp.transpose(params["w"], (3, 2, 0, 1))                     # OIHW
    y = lax.conv_general_dilated(
        x_nchw, w, window_strides=(stride, stride),
        padding=((pad, pad), (pad, pad)),
        dimension_numbers=("NCHW", "OIHW", "NCHW"))
    y = y + params["b"].reshape(1, -1, 1, 1)
    inv = params["gamma"] * lax.rsqrt(params["var"] + eps)
    y = (y - params["mean"].reshape(1, -1, 1, 1)) * inv.reshape(1, -1, 1, 1) \
        + params["beta"].reshape(1, -1, 1, 1)
    B, C, H, W = y.shape
    return y.reshape(B, C, H * W).transpose(0, 2, 1), H, W


if __name__ == "__main__":
    B, in_chans, H_img, W_img, embed_dim = 2, 3, 16, 16, 128
    key = jax.random.PRNGKey(0)
    kx, kp = jax.random.split(key)
    x = jax.random.normal(kx, (B, in_chans, H_img, W_img), jnp.float32)  # NCHW
    params = init_params(kp, in_chans, embed_dim)

    ref, Hr, Wr = reference_forward(x, params)

    # Default path: bf16 MXU inputs, f32 accumulation, f32 output (input dtype).
    out, H, W = overlap_patch_embed(x, params)
    out = jax.block_until_ready(out)
    assert (H, W) == (Hr, Wr), f"spatial mismatch: {(H, W)} vs {(Hr, Wr)}"
    assert out.shape == ref.shape == (B, H * W, embed_dim)
    err_bf16 = jnp.max(jnp.abs(out.astype(jnp.float32) - ref))
    assert err_bf16 < 5e-2, f"bf16 path max abs err = {err_bf16}"

    # Full-f32 path for an exactness check of the fused-phase algorithm.
    out32, _, _ = overlap_patch_embed(x, params, compute_dtype=jnp.float32)
    out32 = jax.block_until_ready(out32)
    err_f32 = jnp.max(jnp.abs(out32 - ref))
    assert err_f32 < 2e-4, f"f32 path max abs err = {err_f32}"

    print("KERNEL_OK")
</pallas_src>

<mosaic_0001>
module attributes {stable_mosaic.version = 11 : i64} {
  func.func @_patch_embed_kernel(%arg0: i32, %arg1: i32, %arg2: memref<1x5x5x64xbf16, #tpu.memory_space<vmem>>, %arg3: memref<256x128xbf16, #tpu.memory_space<vmem>>, %arg4: memref<1x128xf32, #tpu.memory_space<vmem>>, %arg5: memref<1x16x128xf32, #tpu.memory_space<vmem>>) attributes {dimension_semantics = [#tpu.dimension_semantics<parallel>, #tpu.dimension_semantics<parallel>], iteration_bounds = array<i64: 2, 1>, scalar_prefetch = 0 : i64, scratch_operands = 0 : i64, tpu.core_type = #tpu.core_type<tc>, window_params = [{transform_indices = @transform_0, window_bounds = array<i64: 1, 5, 5, 64>}, {pipeline_mode = #tpu.pipeline_mode<synchronous>, transform_indices = @transform_1, window_bounds = array<i64: 256, 128>}, {pipeline_mode = #tpu.pipeline_mode<synchronous>, transform_indices = @transform_2, window_bounds = array<i64: 1, 128>}, {transform_indices = @transform_3, window_bounds = array<i64: 1, 16, 128>}]} {
    %c4_i32 = arith.constant 4 : i32
    %0 = arith.muli %arg1, %c4_i32 : i32
    %1 = tpu.assume_multiple %0, 4 : i32
    %c0_i32 = arith.constant 0 : i32
    %2 = arith.addi %1, %c0_i32 : i32
    %c0 = arith.constant 0 : index
    %3 = arith.index_cast %2 : i32 to index
    %c0_0 = arith.constant 0 : index
    %c0_1 = arith.constant 0 : index
    %4 = vector.load %arg2[%c0, %3, %c0_0, %c0_1] : memref<1x5x5x64xbf16, #tpu.memory_space<vmem>>, vector<1x4x4x64xbf16>
    %5 = vector.shape_cast %4 : vector<1x4x4x64xbf16> to vector<4x4x64xbf16>
    %6 = vector.shape_cast %5 : vector<4x4x64xbf16> to vector<16x64xbf16>
    %c0_i32_2 = arith.constant 0 : i32
    %7 = arith.addi %1, %c0_i32_2 : i32
    %c0_3 = arith.constant 0 : index
    %8 = arith.index_cast %7 : i32 to index
    %c1 = arith.constant 1 : index
    %c0_4 = arith.constant 0 : index
    %9 = vector.load %arg2[%c0_3, %8, %c1, %c0_4] : memref<1x5x5x64xbf16, #tpu.memory_space<vmem>>, vector<1x4x4x64xbf16>
    %10 = vector.shape_cast %9 : vector<1x4x4x64xbf16> to vector<4x4x64xbf16>
    %11 = vector.shape_cast %10 : vector<4x4x64xbf16> to vector<16x64xbf16>
    %c1_i32 = arith.constant 1 : i32
    %12 = arith.addi %1, %c1_i32 : i32
    %c0_5 = arith.constant 0 : index
    %13 = arith.index_cast %12 : i32 to index
    %c0_6 = arith.constant 0 : index
    %c0_7 = arith.constant 0 : index
    %14 = vector.load %arg2[%c0_5, %13, %c0_6, %c0_7] : memref<1x5x5x64xbf16, #tpu.memory_space<vmem>>, vector<1x4x4x64xbf16>
    %15 = vector.shape_cast %14 : vector<1x4x4x64xbf16> to vector<4x4x64xbf16>
    %16 = vector.shape_cast %15 : vector<4x4x64xbf16> to vector<16x64xbf16>
    %c1_i32_8 = arith.constant 1 : i32
    %17 = arith.addi %1, %c1_i32_8 : i32
    %c0_9 = arith.constant 0 : index
    %18 = arith.index_cast %17 : i32 to index
    %c1_10 = arith.constant 1 : index
    %c0_11 = arith.constant 0 : index
    %19 = vector.load %arg2[%c0_9, %18, %c1_10, %c0_11] : memref<1x5x5x64xbf16, #tpu.memory_space<vmem>>, vector<1x4x4x64xbf16>
    %20 = vector.shape_cast %19 : vector<1x4x4x64xbf16> to vector<4x4x64xbf16>
    %21 = vector.shape_cast %20 : vector<4x4x64xbf16> to vector<16x64xbf16>
    %22 = tpu.concatenate %6, %11, %16, %21 in 1 : vector<16x64xbf16>, vector<16x64xbf16>, vector<16x64xbf16>, vector<16x64xbf16> -> vector<16x256xbf16>
    %c0_12 = arith.constant 0 : index
    %c0_13 = arith.constant 0 : index
    %23 = vector.load %arg3[%c0_12, %c0_13] : memref<256x128xbf16, #tpu.memory_space<vmem>>, vector<256x128xbf16>
    %cst = arith.constant dense<0.000000e+00> : vector<16x128xf32>
    %24 = tpu.matmul %22, %23, %cst {dimension_numbers = #tpu.dot_dimension_numbers<[1], [0], [0], [1], [0, 0, 1, 1], [], []>} : vector<16x256xbf16>, vector<256x128xbf16>, vector<16x128xf32> -> vector<16x128xf32>
    %c0_14 = arith.constant 0 : index
    %c0_15 = arith.constant 0 : index
    %25 = vector.load %arg4[%c0_14, %c0_15] : memref<1x128xf32, #tpu.memory_space<vmem>>, vector<1x128xf32>
    %26 = vector.broadcast %25 : vector<1x128xf32> to vector<16x128xf32>
    %27 = arith.addf %24, %26 : vector<16x128xf32>
    %c0_16 = arith.constant 0 : index
    %c0_17 = arith.constant 0 : index
    %c0_18 = arith.constant 0 : index
    %28 = vector.load %arg5[%c0_16, %c0_17, %c0_18] : memref<1x16x128xf32, #tpu.memory_space<vmem>>, vector<1x16x128xf32>
    %29 = vector.shape_cast %28 : vector<1x16x128xf32> to vector<16x128xf32>
    %30 = vector.shape_cast %27 : vector<16x128xf32> to vector<1x16x128xf32>
    tpu.vector_store %arg5[%c0_16, %c0_17, %c0_18], %30 {strides = array<i32>} : memref<1x16x128xf32, #tpu.memory_space<vmem>>, vector<1x16x128xf32>,
    return
  }
  func.func @transform_0(%arg0: i32, %arg1: i32) -> (i32, i32, i32, i32) {
    %c0_i32 = arith.constant 0 : i32
    %c0_i32_0 = arith.constant 0 : i32
    %c0_i32_1 = arith.constant 0 : i32
    %c0_i32_2 = arith.constant 0 : i32
    return %arg0, %c0_i32, %c0_i32_0, %c0_i32_1 : i32, i32, i32, i32
  }
  func.func @transform_1(%arg0: i32, %arg1: i32) -> (i32, i32) {
    %c0_i32 = arith.constant 0 : i32
    %c0_i32_0 = arith.constant 0 : i32
    %c0_i32_1 = arith.constant 0 : i32
    return %c0_i32, %c0_i32_0 : i32, i32
  }
  func.func @transform_2(%arg0: i32, %arg1: i32) -> (i32, i32) {
    %c0_i32 = arith.constant 0 : i32
    %c0_i32_0 = arith.constant 0 : i32
    %c0_i32_1 = arith.constant 0 : i32
    return %c0_i32, %c0_i32_0 : i32, i32
  }
  func.func @transform_3(%arg0: i32, %arg1: i32) -> (i32, i32, i32) {
    %c0_i32 = arith.constant 0 : i32
    %c0_i32_0 = arith.constant 0 : i32
    return %arg0, %arg1, %c0_i32 : i32, i32, i32
  }
}

</mosaic_0001>

<bundles_post_ra>
// kernel: tpu_custom_call.1
= control target key start
LH: loop header
LB: loop body
LE: loop exit
PB: predicated region body
PF: predicated region fallthrough
CT: control target
= control target key end

     0   :  { %8 = vsyncpa [#allocation3], 0  ;;  %s1285_s0 = inlined_call_operand.vmem [shape: bf16[2,5,5,64], index: 0, kind: input, shape index: {}]   ;;  %s1286_s1 = inlined_call_operand.hbm [shape: bf16[256,128], index: 1, kind: input, shape index: {}]   ;;  %s1287_s2 = inlined_call_operand.vmem [shape: f32[1,128], index: 2, kind: input, shape index: {}]   ;;  %s1288_s3 = inlined_call_operand.hbm [shape: f32[2,16,128], index: 3, kind: output, shape index: {}]  }
   0x1   :  { %9 = vsyncpa [#allocation4], 0 }
   0x2   :  { %11 = vsyncpa [#allocation4 + $0x1], 0  ;;  %s1094_s12 = smov 0   ;;  %s1096_s13 = smov 0  }
   0x3   :  { %s1098_s14 = smov 0   ;;  %s1100_s15 = smov 0  }
   0x4   :  { %s1102_s16 = smov 0   ;;  %s1104_s17 = smov 0  }
   0x5 LB: > { %s787_s18 = sadd.s32 4294967295, %s1064_s17   ;;  %s788_s19 = sadd.s32 4294967294, %s1064_s17   ;;  %s1064_s17 = sphi %s1104_s17, %s17_s17   ;;  %s1060_s16 = sphi %s1102_s16, %s1310_s16   ;;  %s1056_s15 = sphi %s1100_s15, %s1309_s15   ;;  %s1052_s14 = sphi %s1098_s14, %s1308_s14   ;;  %s1048_s13 = sphi %s1096_s13, %s1307_s13   ;;  %s1044_s12 = sphi %s1094_s12, %s1306_s12  }
   0x6   : > { %s29_s20 = sadd.s32 1, %s1060_s16  ;;  %s106_s21 = sadd.s32 1, %s1052_s14 }
   0x7   : > { %p31_p0 = scmp.ge.s32.totalorder %s29_s20, 2  ;;  %p116_p1 = scmp.ne.s32.totalorder %s1052_s14, %s1048_s13 }
   0x8   : > { %p117_p2 = scmp.eq.s32.totalorder %s787_s18, 1  ;;  %p122_p3 = scmp.ne.s32.totalorder %s1048_s13, %s1044_s12 }
   0x9   : > { %s1312_s20 = smov (%p31_p0, %s29_s20), 0  ;;  %p123_p5 = scmp.eq.s32.totalorder %s788_s19, 1 }
   0xa   : > { %p1134_p4 = por %p117_p2, %p116_p1  ;;  %s101_s23 = ssub.s32 %s1060_s16, %s1312_s20 }
   0xb   : > { %p789_p6 = scmp.ge.s32.totalorder %s1064_s17, 1  ;;  %p104_p7 = scmp.eq.s32.totalorder %s101_s23, 0 }
   0xc   : > { %s1293_s22 = scalar_select %p1134_p4, 1, 0 }
   0xd   : > { %p1141_p8 = por %p123_p5, %p122_p3  ;;  %p130_p9 = scmp.lt.s32.totalorder %s1064_s17, 3 }
   0xe   : > { %s1147_s25 = scalar_select %p104_p7, %s1052_s14, %s106_s21  }
   0xf   : > { %s1294_s24 = scalar_select %p1141_p8, 1, 0 }
  0x10   : > { %p1149_p10 = pnand %p789_p6, %p130_p9  ;;  %p1153_p11 = scmp.eq.s32.totalorder %s787_s18, 0 }
  0x11   : > { %s1066_s28 = smov [#allocation2]   ;;  %s954_s6 = scalar_lea.hbm %s1286_s1, 2048 }
  0x12   : > { %s1295_s26 = scalar_select %p1149_p10, 1, 0 }
  0x13   : > { %s1296_s27 = scalar_select %p1153_p11, 1, 0 }
  0x14   : > { %p864_p12 = pneg %p1149_p10  ;;  %s142_s29 = sshll.u32 %s1066_s28, 4  ;;  %s143_s29 = int_to_ptr.vmem [resolvable:$true] %s142_s29 }
  0x15   : > { %p955_p0 = scmp.ne.s32.totalorder %s1286_s1, %s954_s6  ;;  %p961_p5 = scmp.lt.u32.totalorder %s954_s6, %s1286_s1 }
  0x16   : > { %p1161_p13 = pnand %p1153_p11, %p864_p12 }
  0x18   : > { %p956_p1 = pneg %p1161_p13 }
  0x1a   : > { %p957_p2 = pnand %p956_p1, %p955_p0 }
  0x1c   : > { %p958_p3 = pneg %p957_p2 }
  0x1e   : > { %p963_p6 = pnand %p961_p5, %p958_p3 }
  0x20   : > { %966 = shalt.err (!%p963_p6)
}
  0x21   : > { %s967_s11 = scalar_lea.vmem %s143_s29, 2048  ;;  %p975_p8 = scmp.lt.s32.totalorder %s143_s29, %s143_s29 }
  0x22   : > { %p968_p7 = scmp.ne.s32.totalorder %s143_s29, %s967_s11  ;;  %p976_p4 = scmp.lt.s32.totalorder %s967_s11, %s967_s11 }
  0x24   : > { %p970_p9 = pnand %p968_p7, %p956_p1  ;;  %p977_p11 = por %p976_p4, %p975_p8 }
  0x26   : > { %p971_p12 = pneg %p970_p9 }
  0x28   : > { %p978_p10 = pnand %p977_p11, %p971_p12 }
  0x2a   : > { %981 = shalt.err (!%p978_p10)
}
  0x2b   : > { %s1067_s18 = smov 64   ;;  %s1068_s19 = smov 4  }
  0x2c   : > { %867 = dma.hbm_to_vmem [thread:$0]  (!%p1161_p13), %s1286_s1, 2048, %s143_s29, [#allocation3], %s1067_s18, %s1067_s18, %s1068_s19  }
  0x2d   : > { %p1298_p0 = scmp.ne.s32.totalorder %s1295_s26, 0 }
  0x2e   : > { %p1299_p2 = scmp.ne.s32.totalorder (!%p1298_p0), %s1296_s27, 0 }
  0x2f   : > { %169 = sbr.rel (%p1298_p0) target bundleno = 439 (0x1b7), region = 32 }
  0x36   : > { %1035 = dma.done.wait (%p1299_p2), [#allocation3], 2048  }
  0x37   : > { %1037 = vsyncadd (%p1299_p2), [#allocation3], 4294965248  ;;  %p193_p4 = scmp.lt.s32.totalorder %s1056_s15, 1  ;;  %v422_v0 = vlaneseq  ;;  %vm247_vm0 = vsmask.f32 1280  ;;  %v930_v22 = vld [vmem:[#allocation2 + $0x40] sm:$0xff]  }
  0x38   : > { %vm248_vm1 = vsmask.f32 3336  ;;  %vm250_vm2 = vsmask.f32 5392  ;;  %vm252_vm3 = vsmask.f32 7448  ;;  %835 = vmatprep.subr.bf16.mxu0 %v930_v22 }
  0x39   : > { %s194_s28 = scalar_select %p193_p4, %s1056_s15, 1  ;;  %v1194_v1 = vshrl.u32 %v422_v0, 7  ;;  %vm249_vm4 = vmor %vm247_vm0, %vm248_vm1  ;;  %v1069_v16 = vmov 1983009808   ;;  %v931_v27 = vld [vmem:[#allocation2] sm:$0xff]   ;;  %v932_v33 = vld [vmem:[#allocation2 + $0x48] sm:$0xff]  }
  0x3a   : > { %vm1199_vm5 = vmor %vm249_vm4, %vm250_vm2  ;;  %v420_v17 = vunpack.c.l.s4 %v1069_v16  ;;  %836 = vmatpush3.bf16.msra.mxu0 %v931_v27  ;;  %v933_v47 = vld [vmem:[#allocation2 + $0x8] sm:$0xff]   ;;  %v934_v55 = vld [vmem:[#allocation2 + $0x50] sm:$0xff]   ;;  %s1070_s27 = smov 64   ;;  %vm493_vm7 = vcmask 523264   ;;  %s190_s5 = sand.u32 1, %s1048_s13  }
  0x3b   : > { %s857_s4 = smul.u32 20, %s194_s28  ;;  %vm1207_vm6 = vmor %vm1199_vm5, %vm252_vm3  ;;  %837 = vmatprep.subr.bf16.mxu0 %v932_v33  ;;  %v935_v62 = vld [vmem:[#allocation2 + $0x10] sm:$0xff]   ;;  %v940_v16 = vld [vmem:[#allocation2 + $0x68] sm:$0xff]   ;;  %s794_s6 = sshll.u32 %s190_s5, 4 }
  0x3c   : > { %v421_v45 = vunpack.c.0.s8 %v420_v17  ;;  %v944_v27 = vld [vmem:[#allocation2 + $0x78] sm:$0xff]   ;;  %s192_s9 = scalar_lea.vmem [#allocation5], %s794_s6  ;;  %s834_s11 = sshll.u32 %s1056_s15, 8 }
  0x3d   : > { %s1192_s26 = scalar_lea.vmem %s1285_s0, %s857_s4  ;;  %s696_s10 = sshll.u32 %s192_s9, 4  ;;  %s1232_s10 = int_to_ptr.vmem [resolvable:$true] %s696_s10 }
  0x3e   : > { %v808_v2 = vld.sshfl [vmem:[%s1192_s26 + $0x4] sm:$0x13 pattern:$0x76325410]  ;;  %838 = vmatpush3.bf16.msra.mxu0 %v933_v47  ;;  %v424_v59 = vsub.s32 %v421_v45, %v1194_v1  ;;  %s1237_s21 = scalar_lea.hbm %s1288_s3, %s834_s11  ;;  %s1239_s23 = scalar_lea.sflag [#allocation4], %s190_s5 }
  0x3f   : > { %v809_v3 = vld.sshfl [vmem:[%s1192_s26 + $0x8] sm:$0x13 pattern:$0x76325410]  ;;  %v332_v4 = vcombine.high %v808_v2, %v808_v2  ;;  %v358_v5 = vshrl.u32 %v808_v2, 16  ;;  %v361_v6 = vshll.u32 %v808_v2, 16  ;;  %839 = vmatprep.subr.bf16.mxu0 %v934_v55 }
  0x40   : > { %v810_v7 = vld.sshfl [vmem:[%s1192_s26 + $0xc] sm:$0x13 pattern:$0x76325410]  ;;  %v340_v8 = vcombine.high %v809_v3, %v809_v3  ;;  %v372_v9 = vshrl.u32 %v809_v3, 16  ;;  %v375_v10 = vshll.u32 %v809_v3, 16 }
  0x41   : > { %v811_v12 = vld.sshfl [vmem:[%s1192_s26 + $0x10] sm:$0x13 pattern:$0x76325410]  ;;  %v348_v13 = vcombine.high %v810_v7, %v810_v7  ;;  %v360_v14 = vrot.slane %v358_v5, 6  ;;  %v363_v15 = vrot.slane %v361_v6, 7 }
  0x42   : > { %v356_v18 = vcombine.high %v811_v12, %v811_v12  ;;  %v367_v19 = vshll.u32 %v332_v4, 16  ;;  %v374_v20 = vrot.slane %v372_v9, 6  ;;  %v377_v21 = vrot.slane %v375_v10, 7  ;;  %v936_v3 = vld [vmem:[#allocation2 + $0x58] sm:$0xff]   ;;  %840 = vmatpush3.bf16.msra.mxu0 %v935_v62  ;;  %s982_s28 = scalar_lea.vmem %s1232_s10, 256  ;;  %p1304_p10 = scmp.ne.s32.totalorder %s1293_s22, 0 }
  0x43   : > { %v364_v23 = vor.u32 %v363_v15, %v360_v14  ;;  %v381_v24 = vshll.u32 %v340_v8, 16  ;;  %v386_v25 = vshrl.u32 %v810_v7, 16  ;;  %v389_v26 = vshll.u32 %v810_v7, 16  ;;  %v937_v4 = vld [vmem:[#allocation2 + $0x18] sm:$0xff]   ;;  %841 = vmatprep.subr.bf16.mxu0 %v936_v3  ;;  %v938_v8 = vld [vmem:[#allocation2 + $0x60] sm:$0xff]   ;;  %p983_p8 = scmp.ne.s32.totalorder %s1232_s10, %s982_s28  ;;  %s1071_s15 = smov [#allocation5]  }
  0x44   : > { %v369_v29 = vrot.slane %v367_v19, 7  ;;  %v378_v30 = vor.u32 %v377_v21, %v374_v20  ;;  %v395_v31 = vshll.u32 %v348_v13, 16  ;;  %v400_v32 = vshrl.u32 %v811_v12, 16  ;;  %v939_v13 = vld [vmem:[#allocation2 + $0x20] sm:$0xff]   ;;  %v942_v20 = vld [vmem:[#allocation2 + $0x70] sm:$0xff]   ;;  %s986_s4 = sshll.u32 %s1071_s15, 4  ;;  %s987_s4 = int_to_ptr.vmem [resolvable:$false] %s986_s4 }
  0x45   : > { %v365_v34 = vrot.slane %v364_v23, 2  ;;  %v383_v35 = vrot.slane %v381_v24, 7  ;;  %v388_v36 = vrot.slane %v386_v25, 6  ;;  %v391_v37 = vrot.slane %v389_v26, 7  ;;  %v943_v24 = vld [vmem:[#allocation2 + $0x30] sm:$0xff]   ;;  %p984_p11 = pnand %p983_p8, %p1304_p10  ;;  %s988_s30 = scalar_lea.vmem %s987_s4, 512 }
  0x46   : > { %v379_v38 = vrot.slane %v378_v30, 2  ;;  %v397_v39 = vrot.slane %v395_v31, 7  ;;  %v402_v40 = vrot.slane %v400_v32, 6  ;;  %v403_v41 = vshll.u32 %v811_v12, 16  ;;  %842 = vmatpush3.bf16.msra.mxu0 %v937_v4  ;;  %p989_p1 = scmp.lt.s32.totalorder %s1232_s10, %s987_s4  ;;  %p990_p3 = scmp.lt.s32.totalorder %s988_s30, %s982_s28 }
  0x47   : > { %v370_v42 = vsel %vm1207_vm6, %v365_v34, %v369_v29  ;;  %v392_v43 = vor.u32 %v391_v37, %v388_v36  ;;  %v409_v44 = vshll.u32 %v356_v18, 16  ;;  %v796_v46 = vld.sshfl [vmem:[%s1192_s26] sm:$0x13 pattern:$0x76325410]  ;;  %843 = vmatprep.subr.bf16.mxu0 %v938_v8  ;;  %v941_v18 = vld [vmem:[#allocation2 + $0x28] sm:$0xff]   ;;  %p985_p13 = pneg %p984_p11 }
  0x48   : > { %v384_v48 = vsel %vm1207_vm6, %v379_v38, %v383_v35  ;;  %v405_v49 = vrot.slane %v403_v41, 7  ;;  %v222_v50 = vcombine.high %v796_v46, %v796_v46  ;;  %v255_v51 = vshrl.u32 %v796_v46, 16  ;;  %v950_v22 = vld.sshfl [vmem:[%s1192_s26 + $0x4] sm:$0xf pattern:$0x76325410]  ;;  %p991_p5 = por %p990_p3, %p989_p1 }
  0x49   : > { %v393_v52 = vrot.slane %v392_v43, 2  ;;  %v411_v53 = vrot.slane %v409_v44, 7  ;;  %v258_v54 = vshll.u32 %v796_v46, 16  ;;  %v474_v60 = vcombine.low %v370_v42, %v384_v48  ;;  %v947_v29 = vld [vmem:[#allocation2 + $0x38] sm:$0xff]  }
  0x4a   : > { %v406_v56 = vor.u32 %v405_v49, %v402_v40  ;;  %v257_v57 = vrot.slane %v255_v51, 6  ;;  %v264_v58 = vshll.u32 %v222_v50, 16  ;;  %844 = vmatpush3.bf16.msra.mxu0 %v939_v13  ;;  %v951_v23 = vld.sshfl [vmem:[%s1192_s26 + $0xc] sm:$0xf pattern:$0x76325410]  ;;  %p992_p6 = pnand %p991_p5, %p985_p13 }
  0x4b   : > { %v260_v61 = vrot.slane %v258_v54, 7  ;;  %v398_v63 = vsel %vm1207_vm6, %v393_v52, %v397_v39  ;;  %v482_v9 = vrot.slane %v474_v60, %v424_v59  ;;  %845 = vmatprep.subr.bf16.mxu0 %v940_v16  ;;  %v952_v25 = vld.sshfl [vmem:[%s1192_s26] sm:$0xf pattern:$0x76325410]  ;;  %v473_v28 = vcombine.low %v950_v22, %v951_v23 }
  0x4c   : > { %v407_v0 = vrot.slane %v406_v56, 2  ;;  %v266_v2 = vrot.slane %v264_v58, 7  ;;  %v435_v7 = vcombine.low %v384_v48, %v398_v63  ;;  %v953_v26 = vld.sshfl [vmem:[%s1192_s26 + $0x8] sm:$0xf pattern:$0x76325410] }
  0x4d   : > { %v261_v5 = vor.u32 %v260_v61, %v257_v57  ;;  %v433_v30 = vcombine.low %v952_v25, %v953_v26  ;;  %v812_v36 = vld [vmem:[%s1287_s2] ss:$0 sm:$0xff] }
  0x4e   : > { %v412_v6 = vsel %vm1207_vm6, %v407_v0, %v411_v53  ;;  %v449_v15 = vrot.slane %v435_v7, %v424_v59  ;;  %846 = vmatpush3.bf16.msra.mxu0 %v941_v18 }
  0x4f   : > { %v475_v1 = vcombine.low %v398_v63, %v412_v6  ;;  %v262_v10 = vrot.slane %v261_v5, 2  ;;  %847 = vmatprep.subr.bf16.mxu0 %v942_v20 }
  0x51   : > { %v489_v11 = vrot.slane %v475_v1, %v424_v59  ;;  %v267_v12 = vsel %vm1207_vm6, %v262_v10, %v266_v2 }
  0x52   : > { %v434_v14 = vcombine.low %v267_v12, %v370_v42  ;;  %848 = vmatpush3.bf16.msra.mxu0 %v943_v24 }
  0x53   : > { %v490_v17 = vcombine.low %v482_v9, %v489_v11  ;;  %849 = vmatprep.subr.bf16.mxu0 %v944_v27 }
  0x54   : > { %v442_v19 = vrot.slane %v434_v14, %v424_v59 }
  0x55   : > { %491 = vrot.lane.b32.xlu0 %v490_v17, %s1070_s27 }
  0x56   : > { %v450_v21 = vcombine.low %v442_v19, %v449_v15  ;;  %850 = vmatpush3.bf16.msra.mxu0 %v947_v29 }
  0x59   : > { %451 = vrot.lane.b32.xlu0 %v450_v21, %s1070_s27 }
  0xc7   : > { %v492_v31 = vpop.permute.xlu0 %491 }
  0xc8   : > { %v500_v32 = vsel %vm493_vm7, %v473_v28, %v492_v31 }
  0xc9   : > { %669 = vmatprep.mubr.bf16.mxu0 %v500_v32 }
  0xcb   : > { %v452_v33 = vpop.permute.xlu0 %451 }
  0xcc   : > { %v496_v34 = vsel %vm493_vm7, %v433_v30, %v452_v33 }
  0xcd   : > { %670 = vmatmul.mubr.bf16.vlgmr.msra.gmra.mrb[0].mxu0 %v496_v34 }
 0x1a0   : > { %v851_v35 = vpop.f32.mrb[0].mxu0 }
 0x1a1   : > { %v852_v37 = vpop.f32.mrb[1].mxu0 }
 0x1a2   : > { %v853_v38 = vadd.f32 %v852_v37, %v851_v35  ;;  %v854_v39 = vpop.f32.mrb[2].mxu0 }
 0x1a3   : > { %v855_v40 = vpop.f32.mrb[3].mxu0 }
 0x1a4   : > { %v672_v41 = vadd.f32 %v853_v38, %v812_v36  ;;  %v856_v42 = vadd.f32 %v855_v40, %v854_v39 }
 0x1a6   : > { %678 = vst [vmem:[%s192_s9] sm:$0xff] %v672_v41  ;;  %v675_v43 = vadd.f32 %v856_v42, %v812_v36 }
 0x1a8   : > { %679 = vst [vmem:[%s192_s9 + $0x8] sm:$0xff] %v675_v43 }
 0x1a9   : > { %995 = shalt.err (!%p992_p6)
}
 0x1aa   : > { %s996_s29 = scalar_lea.hbm %s1237_s21, 256  ;;  %s1000_s5 = scalar_lea.hbm %s1288_s3, 512 }
 0x1ab   : > { %p997_p7 = scmp.ne.s32.totalorder %s1237_s21, %s996_s29  ;;  %p1001_p0 = scmp.lt.u32.totalorder %s1237_s21, %s1288_s3 }
 0x1ac   : > { %p1002_p2 = scmp.lt.u32.totalorder %s1000_s5, %s996_s29  ;;  %p1004_p8 = scmp.lt.u32.totalorder %s996_s29, %s1237_s21 }
 0x1ad   : > { %p998_p9 = pnand %p997_p7, %p1304_p10 }
 0x1ae   : > { %p1003_p4 = por %p1002_p2, %p1001_p0 }
 0x1af   : > { %p999_p12 = pneg %p998_p9 }
 0x1b0   : > { %p1005_p11 = por %p1004_p8, %p1003_p4 }
 0x1b2   : > { %p1006_p13 = pnand %p1005_p11, %p999_p12 }
 0x1b4   : > { %1009 = shalt.err (!%p1006_p13)
}
 0x1b5   : > { %s1072_s8 = smov 128   ;;  %s1073_s9 = smov 8  }
 0x1b6   : > { %862 = dma.vmem_to_hbm [thread:$0]  (%p1304_p10), %s1232_s10, 256, %s1237_s21, %s1239_s23, %s1072_s8, %s1072_s8, %s1073_s9  }
 0x1b7 PF: > { %p874_p1 = scmp.ge.s32.totalorder %s1064_s17, 2  ;;  %s711_s11 = sand.u32 1, %s1044_s12  }
 0x1b8   : > { %p1305_p3 = scmp.ne.s32.totalorder %s1294_s24, 0  ;;  %s712_s18 = scalar_lea.sflag [#allocation4], %s711_s11 }
 0x1ba   : > { %p869_p5 = pnand %p874_p1, %p1305_p3 }
 0x1bc   : > { %1039 = dma.done.wait (!%p869_p5), %s712_s18, 256  }
 0x1bd   : > { %1041 = vsyncadd (!%p869_p5), %s712_s18, 4294967040  ;;  %s17_s17 = sadd.s32 1, %s1064_s17   ;;  %s1306_s12 = smov %s1048_s13 }
 0x1be   : > { %p14_p6 = scmp.ge.s32.totalorder %s17_s17, 4   ;;  %s1307_s13 = smov %s1052_s14 }
 0x1bf   : > { %s1308_s14 = smov %s1147_s25  ;;  %s1309_s15 = smov %s1060_s16 }
 0x1c0   : > { %s1310_s16 = smov %s1312_s20  ;;  %16 = sbr.rel (!%p14_p6) target bundleno = 5 (0x5), region = 74 }
 0x1c7   :  { %717 = vsyncpa [#allocation3], 1 }
 0x1c8   :  { %719 = vsyncpa [#allocation3 + $0x1], 1 }
 0x1c9   :  { %720 = vsyncpa [#allocation4], 1 }
 0x1ca   :  { %722 = vsyncpa [#allocation4 + $0x1], 1 }

</bundles_post_ra>
